<compile_context>
chip_gen: v5e
topology: v5e:2x2
jax: 0.10.0
libtpu: 0.0.40
codegen_flags: <defaults>
</compile_context>

<pallas_src>
import math

import jax
import jax.numpy as jnp
from jax import lax
from jax.experimental import pallas as pl
from jax.experimental.pallas import tpu as pltpu

# Small shapes consistent with the module (input_size -> num_hiddens, 4 heads).
B, T, DIN, D, H, F = 2, 8, 16, 32, 4, 32
DH = D // H
BT = B * T
BH = B * H
LN_EPS = 1e-5
NEG_BIG = -1e9                      # large finite negative (not -inf) for masking
SQRT_D = math.sqrt(D)
INV_SQRT_DH = 1.0 / math.sqrt(DH)


def _layernorm(h, g, b):
    mu = jnp.mean(h, axis=-1, keepdims=True)
    var = jnp.mean((h - mu) ** 2, axis=-1, keepdims=True)
    return (h - mu) * lax.rsqrt(var + LN_EPS) * g + b


def _gru_gate(x, y, wr, ur, wz, uz, wg, ug, bg):
    """GRU gating unit, un-fused: every projection is its own N=32 matmul, so
    no output is ever sliced at a non-lane-0 offset."""
    r = jax.nn.sigmoid(jnp.dot(y, wr, preferred_element_type=jnp.float32)
                       + jnp.dot(x, ur, preferred_element_type=jnp.float32))
    z = jax.nn.sigmoid(jnp.dot(y, wz, preferred_element_type=jnp.float32)
                       + jnp.dot(x, uz, preferred_element_type=jnp.float32) - bg)
    hh = jnp.tanh(jnp.dot(y, wg, preferred_element_type=jnp.float32)
                  + jnp.dot(r * x, ug, preferred_element_type=jnp.float32))
    return (1.0 - z) * x + z * hh


def encoder_kernel(x_ref, aux_ref, hsel_ref, smask_ref, fold_ref, w_ref, out_ref):
    # Token-major input: row i = t*B + b, zero-padded features to D lanes.
    x = x_ref[...]                                    # (BT, D)

    pos    = aux_ref[0:BT, :]                         # positional enc., token-major
    b_emb  = aux_ref[BT + 0:BT + 1, :]
    ln1_g  = aux_ref[BT + 1:BT + 2, :]
    ln1_b  = aux_ref[BT + 2:BT + 3, :]
    ln2_g  = aux_ref[BT + 3:BT + 4, :]
    ln2_b  = aux_ref[BT + 4:BT + 5, :]
    g1_bg  = aux_ref[BT + 5:BT + 6, :]
    g2_bg  = aux_ref[BT + 6:BT + 7, :]
    ffn_b1 = aux_ref[BT + 7:BT + 8, :]
    ffn_b2 = aux_ref[BT + 8:BT + 9, :]

    # weight stack layout (each (D, D)):
    # 0 emb | 1 Wq 2 Wk 3 Wv 4 Wo | 5..10 gate1 [Wr,Ur,Wz,Uz,Wg,Ug]
    # | 11..16 gate2 [Wr,Ur,Wz,Uz,Wg,Ug] | 17 ffn_w1 18 ffn_w2

    # embedding * sqrt(num_hiddens) + positional encoding (dropout p=0 -> identity)
    h = (jnp.dot(x, w_ref[0], preferred_element_type=jnp.float32) + b_emb) \
        * SQRT_D + pos                                # (BT, D)

    # ---------------- EncoderBlock ----------------
    x1 = _layernorm(h, ln1_g, ln1_b)                  # (BT, D)

    # Separate K/V projections on all rows; Q only on the last-token rows,
    # which are a contiguous trailing slice in token-major layout.
    k = jnp.dot(x1, w_ref[2], preferred_element_type=jnp.float32)       # (BT, D)
    v = jnp.dot(x1, w_ref[3], preferred_element_type=jnp.float32)       # (BT, D)

    x1_last = x1[BT - B:BT, :]                        # (B, D) zero-cost trailing view
    h_last = h[BT - B:BT, :]                          # (B, D)
    q_last = jnp.dot(x1_last, w_ref[1], preferred_element_type=jnp.float32)  # (B, D)

    # Block-diagonal multi-head attention: row r = head*B + batch carries q(batch)
    # zeroed outside that head's 8 lanes (precomputed 0/1 head mask), so one
    # (BH, D) x (BT, D)^T dot_general yields every per-head score row at once.
    head_sel = hsel_ref[...]                          # (BH, D) 0/1
    q_big = jnp.concatenate([q_last] * H, axis=0) * head_sel            # (BH, D)

    s = lax.dot_general(q_big, k,
                        dimension_numbers=(((1,), (1,)), ((), ())),
                        preferred_element_type=jnp.float32) * INV_SQRT_DH
    s = s + smask_ref[...]                            # same-batch mask (0 / -1e9)
    s = s - jnp.max(s, axis=-1, keepdims=True)
    e = jnp.exp(s)
    p = e * pl.reciprocal(jnp.sum(e, axis=-1, keepdims=True), approx=True)

    res = jnp.dot(p, v, preferred_element_type=jnp.float32) * head_sel  # (BH, D)
    # Fold the H row-groups back to (B, D) with one constant selection matmul.
    concat = jnp.dot(fold_ref[...], res, preferred_element_type=jnp.float32)

    a1 = jnp.maximum(
        jnp.dot(concat, w_ref[4], preferred_element_type=jnp.float32), 0.0)

    o1 = _gru_gate(h_last, a1,
                   w_ref[5], w_ref[6], w_ref[7], w_ref[8], w_ref[9], w_ref[10],
                   g1_bg)

    x2 = _layernorm(o1, ln2_g, ln2_b)
    h1 = jnp.maximum(
        jnp.dot(x2, w_ref[17], preferred_element_type=jnp.float32) + ffn_b1, 0.0)
    m2 = jnp.dot(h1, w_ref[18], preferred_element_type=jnp.float32) + ffn_b2

    o2 = _gru_gate(o1, m2,
                   w_ref[11], w_ref[12], w_ref[13], w_ref[14], w_ref[15], w_ref[16],
                   g2_bg)

    out_ref[...] = o2                                 # X[:, -1, :]


def pack_params(params):
    """Host-side packing into kernel arrays (aux table, static masks, weight stack)."""
    emb_w, pos, vec, attn_w, g1w, g2w, ffn_w1, ffn_b1, ffn_w2 = params

    aux = jnp.concatenate([
        jnp.repeat(pos, B, axis=0),   # rows [0, BT): positional enc., token-major
        vec[0:1],                     # embedding bias
        vec[1:2], vec[2:3],           # ln1 gamma / beta
        vec[3:4], vec[4:5],           # ln2 gamma / beta
        vec[5:6], vec[6:7],           # gate1 / gate2 bg
        ffn_b1.reshape(1, F),         # ffn dense1 bias
        vec[7:8],                     # ffn dense2 bias
    ], axis=0)                        # (BT + 9, D)

    # Static attention constants (computed once, on host).
    head_sel = ((jnp.arange(BH)[:, None] // B)
                == (jnp.arange(D)[None, :] // DH)).astype(jnp.float32)      # (BH, D)
    score_add = jnp.where((jnp.arange(BH)[:, None] % B)
                          == (jnp.arange(BT)[None, :] % B),
                          0.0, NEG_BIG).astype(jnp.float32)                 # (BH, BT)
    fold_mat = ((jnp.arange(BH)[None, :] % B)
                == jnp.arange(B)[:, None]).astype(jnp.float32)              # (B, BH)

    # gate weight layout in params: [Wr, Ur, Wz, Uz, Wg, Ug]
    emb_pad = jnp.zeros((D, D), jnp.float32).at[:DIN, :].set(emb_w)         # pad K 16->32
    w = jnp.stack([emb_pad,
                   attn_w[0], attn_w[1], attn_w[2], attn_w[3],
                   g1w[0], g1w[1], g1w[2], g1w[3], g1w[4], g1w[5],
                   g2w[0], g2w[1], g2w[2], g2w[3], g2w[4], g2w[5],
                   ffn_w1, ffn_w2])                                          # (19, D, D)
    return aux, head_sel, score_add, fold_mat, w


def transformer_encoder(x, params):
    aux, head_sel, score_add, fold_mat, w = pack_params(params)
    # token-major rows (t*B + b) so the last token's B rows are contiguous at the end
    x_tm = x.transpose(1, 0, 2).reshape(BT, DIN)
    x_pad = jnp.pad(x_tm, ((0, 0), (0, D - DIN)))                           # (BT, D)
    vmem = pl.BlockSpec(memory_space=pltpu.MemorySpace.VMEM)
    return pl.pallas_call(
        encoder_kernel,
        out_shape=jax.ShapeDtypeStruct((B, D), jnp.float32),
        in_specs=[vmem] * 6,
        out_specs=vmem,
    )(x_pad, aux, head_sel, score_add, fold_mat, w)


def reference(x, params):
    """Pure-JAX mirror of the PyTorch forward, for a sanity check."""
    emb_w, pos, vec, attn_w, g1w, g2w, ffn_w1, ffn_b1, ffn_w2 = params
    b_emb, ln1_g, ln1_b, ln2_g, ln2_b, g1_bg, g2_bg, ffn_b2 = [vec[i] for i in range(8)]

    def ln(a, g, bb):
        mu = a.mean(-1, keepdims=True)
        var = ((a - mu) ** 2).mean(-1, keepdims=True)
        return (a - mu) * jax.lax.rsqrt(var + LN_EPS) * g + bb

    def gate(xx, yy, w, bg):
        r = jax.nn.sigmoid(yy @ w[0] + xx @ w[1])
        z = jax.nn.sigmoid(yy @ w[2] + xx @ w[3] - bg)
        hh = jnp.tanh(yy @ w[4] + (r * xx) @ w[5])
        return (1 - z) * xx + z * hh

    h = (x @ emb_w + b_emb) * math.sqrt(D) + pos
    x1 = ln(h, ln1_g, ln1_b)
    q = (x1 @ attn_w[0]).reshape(B, T, H, DH).transpose(0, 2, 1, 3)
    k = (x1 @ attn_w[1]).reshape(B, T, H, DH).transpose(0, 2, 1, 3)
    v = (x1 @ attn_w[2]).reshape(B, T, H, DH).transpose(0, 2, 1, 3)
    s = jnp.einsum('bhtd,bhsd->bhts', q, k) / math.sqrt(DH)
    p = jax.nn.softmax(s, axis=-1)
    o = jnp.einsum('bhts,bhsd->bhtd', p, v).transpose(0, 2, 1, 3).reshape(B, T, D)
    a1 = jnp.maximum(o @ attn_w[3], 0.0)
    o1 = gate(h, a1, g1w, g1_bg)
    x2 = ln(o1, ln2_g, ln2_b)
    m2 = jnp.maximum(x2 @ ffn_w1 + ffn_b1[0], 0.0) @ ffn_w2 + ffn_b2
    o2 = gate(o1, m2, g2w, g2_bg)
    return o2[:, -1, :]


def make_params(key):
    ks = jax.random.split(key, 12)
    scale = 0.1
    emb_w = scale * jax.random.normal(ks[0], (DIN, D), jnp.float32)
    attn_w = scale * jax.random.normal(ks[1], (4, D, D), jnp.float32)
    gate1_w = scale * jax.random.normal(ks[2], (6, D, D), jnp.float32)
    gate2_w = scale * jax.random.normal(ks[3], (6, D, D), jnp.float32)
    ffn_w1 = scale * jax.random.normal(ks[4], (D, F), jnp.float32)
    ffn_b1 = scale * jax.random.normal(ks[5], (1, F), jnp.float32)
    ffn_w2 = scale * jax.random.normal(ks[6], (F, D), jnp.float32)

    # positional encoding table (first T rows)
    t = jnp.arange(T, dtype=jnp.float32)[:, None]
    div = jnp.power(10000.0, jnp.arange(0, D, 2, dtype=jnp.float32) / D)
    ang = t / div
    pos = jnp.zeros((T, D), jnp.float32)
    pos = pos.at[:, 0::2].set(jnp.sin(ang)).at[:, 1::2].set(jnp.cos(ang))

    vec = jnp.stack([
        scale * jax.random.normal(ks[7], (D,), jnp.float32),   # embedding bias
        jnp.ones((D,), jnp.float32),                            # ln1 gamma
        jnp.zeros((D,), jnp.float32),                           # ln1 beta
        jnp.ones((D,), jnp.float32),                            # ln2 gamma
        jnp.zeros((D,), jnp.float32),                           # ln2 beta
        jnp.full((D,), 2.0, jnp.float32),                       # gate1 bg
        jnp.full((D,), 2.0, jnp.float32),                       # gate2 bg
        scale * jax.random.normal(ks[8], (D,), jnp.float32),    # ffn dense2 bias
    ])
    return (emb_w, pos, vec, attn_w, gate1_w, gate2_w, ffn_w1, ffn_b1, ffn_w2)


if __name__ == "__main__":
    key = jax.random.PRNGKey(0)
    kx, kp = jax.random.split(key)
    x = jax.random.normal(kx, (B, T, DIN), jnp.float32)
    params = make_params(kp)

    out = transformer_encoder(x, params)
    out = jax.block_until_ready(out)

    ref = jax.block_until_ready(reference(x, params))
    assert out.shape == (B, D)
    assert jnp.allclose(out, ref, atol=1e-2, rtol=1e-2), "mismatch vs reference"

    print("KERNEL_OK")
</pallas_src>

<mosaic_0001>
module attributes {stable_mosaic.version = 11 : i64} {
  func.func @encoder_kernel(%arg0: memref<16x32xf32, #tpu.memory_space<vmem>>, %arg1: memref<25x32xf32, #tpu.memory_space<vmem>>, %arg2: memref<8x32xf32, #tpu.memory_space<vmem>>, %arg3: memref<8x16xf32, #tpu.memory_space<vmem>>, %arg4: memref<2x8xf32, #tpu.memory_space<vmem>>, %arg5: memref<19x32x32xf32, #tpu.memory_space<vmem>>, %arg6: memref<2x32xf32, #tpu.memory_space<vmem>>) attributes {dimension_semantics = [], scalar_prefetch = 0 : i64, scratch_operands = 0 : i64, tpu.core_type = #tpu.core_type<tc>} {
    %c0 = arith.constant 0 : index
    %c0_0 = arith.constant 0 : index
    %0 = vector.load %arg0[%c0, %c0_0] : memref<16x32xf32, #tpu.memory_space<vmem>>, vector<16x32xf32>
    %c0_1 = arith.constant 0 : index
    %c0_2 = arith.constant 0 : index
    %1 = vector.load %arg1[%c0_1, %c0_2] : memref<25x32xf32, #tpu.memory_space<vmem>>, vector<16x32xf32>
    %c16 = arith.constant 16 : index
    %c0_3 = arith.constant 0 : index
    %2 = vector.load %arg1[%c16, %c0_3] : memref<25x32xf32, #tpu.memory_space<vmem>>, vector<1x32xf32>
    %c17 = arith.constant 17 : index
    %c0_4 = arith.constant 0 : index
    %3 = vector.load %arg1[%c17, %c0_4] : memref<25x32xf32, #tpu.memory_space<vmem>>, vector<1x32xf32>
    %c18 = arith.constant 18 : index
    %c0_5 = arith.constant 0 : index
    %4 = vector.load %arg1[%c18, %c0_5] : memref<25x32xf32, #tpu.memory_space<vmem>>, vector<1x32xf32>
    %c19 = arith.constant 19 : index
    %c0_6 = arith.constant 0 : index
    %5 = vector.load %arg1[%c19, %c0_6] : memref<25x32xf32, #tpu.memory_space<vmem>>, vector<1x32xf32>
    %c20 = arith.constant 20 : index
    %c0_7 = arith.constant 0 : index
    %6 = vector.load %arg1[%c20, %c0_7] : memref<25x32xf32, #tpu.memory_space<vmem>>, vector<1x32xf32>
    %c21 = arith.constant 21 : index
    %c0_8 = arith.constant 0 : index
    %7 = vector.load %arg1[%c21, %c0_8] : memref<25x32xf32, #tpu.memory_space<vmem>>, vector<1x32xf32>
    %c22 = arith.constant 22 : index
    %c0_9 = arith.constant 0 : index
    %8 = vector.load %arg1[%c22, %c0_9] : memref<25x32xf32, #tpu.memory_space<vmem>>, vector<1x32xf32>
    %c23 = arith.constant 23 : index
    %c0_10 = arith.constant 0 : index
    %9 = vector.load %arg1[%c23, %c0_10] : memref<25x32xf32, #tpu.memory_space<vmem>>, vector<1x32xf32>
    %c24 = arith.constant 24 : index
    %c0_11 = arith.constant 0 : index
    %10 = vector.load %arg1[%c24, %c0_11] : memref<25x32xf32, #tpu.memory_space<vmem>>, vector<1x32xf32>
    %c0_12 = arith.constant 0 : index
    %c0_13 = arith.constant 0 : index
    %c0_14 = arith.constant 0 : index
    %11 = vector.load %arg5[%c0_12, %c0_13, %c0_14] : memref<19x32x32xf32, #tpu.memory_space<vmem>>, vector<1x32x32xf32>
    %12 = vector.shape_cast %11 : vector<1x32x32xf32> to vector<32x32xf32>
    %cst = arith.constant dense<0.000000e+00> : vector<16x32xf32>
    %13 = tpu.matmul %0, %12, %cst {dimension_numbers = #tpu.dot_dimension_numbers<[1], [0], [0], [1], [0, 0, 1, 1], [], []>} : vector<16x32xf32>, vector<32x32xf32>, vector<16x32xf32> -> vector<16x32xf32>
    %14 = vector.broadcast %2 : vector<1x32xf32> to vector<16x32xf32>
    %15 = arith.addf %13, %14 : vector<16x32xf32>
    %cst_15 = arith.constant 5.65685415 : f32
    %16 = vector.broadcast %cst_15 : f32 to vector<16x32xf32>
    %17 = arith.mulf %15, %16 : vector<16x32xf32>
    %18 = arith.addf %17, %1 : vector<16x32xf32>
    %cst_16 = arith.constant dense<0.000000e+00> : vector<16xf32>
    %19 = vector.multi_reduction <add>, %18, %cst_16 [1] : vector<16x32xf32> to vector<16xf32>
    %20 = vector.shape_cast %19 : vector<16xf32> to vector<16x1xf32>
    %cst_17 = arith.constant 3.200000e+01 : f32
    %21 = vector.broadcast %cst_17 : f32 to vector<16x1xf32>
    %22 = arith.divf %20, %21 : vector<16x1xf32>
    %23 = vector.broadcast %22 : vector<16x1xf32> to vector<16x32xf32>
    %24 = arith.subf %18, %23 : vector<16x32xf32>
    %25 = arith.mulf %24, %24 : vector<16x32xf32>
    %cst_18 = arith.constant dense<0.000000e+00> : vector<16xf32>
    %26 = vector.multi_reduction <add>, %25, %cst_18 [1] : vector<16x32xf32> to vector<16xf32>
    %27 = vector.shape_cast %26 : vector<16xf32> to vector<16x1xf32>
    %cst_19 = arith.constant 3.200000e+01 : f32
    %28 = vector.broadcast %cst_19 : f32 to vector<16x1xf32>
    %29 = arith.divf %27, %28 : vector<16x1xf32>
    %30 = vector.broadcast %22 : vector<16x1xf32> to vector<16x32xf32>
    %31 = arith.subf %18, %30 : vector<16x32xf32>
    %cst_20 = arith.constant 9.99999974E-6 : f32
    %32 = vector.broadcast %cst_20 : f32 to vector<16x1xf32>
    %33 = arith.addf %29, %32 : vector<16x1xf32>
    %34 = math.rsqrt %33 : vector<16x1xf32>
    %35 = vector.broadcast %34 : vector<16x1xf32> to vector<16x32xf32>
    %36 = arith.mulf %31, %35 : vector<16x32xf32>
    %37 = vector.broadcast %3 : vector<1x32xf32> to vector<16x32xf32>
    %38 = arith.mulf %36, %37 : vector<16x32xf32>
    %39 = vector.broadcast %4 : vector<1x32xf32> to vector<16x32xf32>
    %40 = arith.addf %38, %39 : vector<16x32xf32>
    %c2 = arith.constant 2 : index
    %c0_21 = arith.constant 0 : index
    %c0_22 = arith.constant 0 : index
    %41 = vector.load %arg5[%c2, %c0_21, %c0_22] : memref<19x32x32xf32, #tpu.memory_space<vmem>>, vector<1x32x32xf32>
    %42 = vector.shape_cast %41 : vector<1x32x32xf32> to vector<32x32xf32>
    %cst_23 = arith.constant dense<0.000000e+00> : vector<16x32xf32>
    %43 = tpu.matmul %40, %42, %cst_23 {dimension_numbers = #tpu.dot_dimension_numbers<[1], [0], [0], [1], [0, 0, 1, 1], [], []>} : vector<16x32xf32>, vector<32x32xf32>, vector<16x32xf32> -> vector<16x32xf32>
    %c3 = arith.constant 3 : index
    %c0_24 = arith.constant 0 : index
    %c0_25 = arith.constant 0 : index
    %44 = vector.load %arg5[%c3, %c0_24, %c0_25] : memref<19x32x32xf32, #tpu.memory_space<vmem>>, vector<1x32x32xf32>
    %45 = vector.shape_cast %44 : vector<1x32x32xf32> to vector<32x32xf32>
    %cst_26 = arith.constant dense<0.000000e+00> : vector<16x32xf32>
    %46 = tpu.matmul %40, %45, %cst_26 {dimension_numbers = #tpu.dot_dimension_numbers<[1], [0], [0], [1], [0, 0, 1, 1], [], []>} : vector<16x32xf32>, vector<32x32xf32>, vector<16x32xf32> -> vector<16x32xf32>
    %47 = vector.extract_strided_slice %40 {offsets = [14, 0], sizes = [2, 32], strides = [1, 1]} : vector<16x32xf32> to vector<2x32xf32>
    %48 = vector.extract_strided_slice %18 {offsets = [14, 0], sizes = [2, 32], strides = [1, 1]} : vector<16x32xf32> to vector<2x32xf32>
    %c1 = arith.constant 1 : index
    %c0_27 = arith.constant 0 : index
    %c0_28 = arith.constant 0 : index
    %49 = vector.load %arg5[%c1, %c0_27, %c0_28] : memref<19x32x32xf32, #tpu.memory_space<vmem>>, vector<1x32x32xf32>
    %50 = vector.shape_cast %49 : vector<1x32x32xf32> to vector<32x32xf32>
    %cst_29 = arith.constant dense<0.000000e+00> : vector<2x32xf32>
    %51 = tpu.matmul %47, %50, %cst_29 {dimension_numbers = #tpu.dot_dimension_numbers<[1], [0], [0], [1], [0, 0, 1, 1], [], []>} : vector<2x32xf32>, vector<32x32xf32>, vector<2x32xf32> -> vector<2x32xf32>
    %c0_30 = arith.constant 0 : index
    %c0_31 = arith.constant 0 : index
    %52 = vector.load %arg2[%c0_30, %c0_31] : memref<8x32xf32, #tpu.memory_space<vmem>>, vector<8x32xf32>
    %53 = tpu.concatenate %51, %51, %51, %51 in 0 : vector<2x32xf32>, vector<2x32xf32>, vector<2x32xf32>, vector<2x32xf32> -> vector<8x32xf32>
    %54 = arith.mulf %53, %52 : vector<8x32xf32>
    %cst_32 = arith.constant dense<0.000000e+00> : vector<8x16xf32>
    %55 = tpu.matmul %54, %43, %cst_32 {dimension_numbers = #tpu.dot_dimension_numbers<[1], [1], [0], [0], [0, 0, 1, 0], [], []>} : vector<8x32xf32>, vector<16x32xf32>, vector<8x16xf32> -> vector<8x16xf32>
    %cst_33 = arith.constant 0.353553385 : f32
    %56 = vector.broadcast %cst_33 : f32 to vector<8x16xf32>
    %57 = arith.mulf %55, %56 : vector<8x16xf32>
    %c0_34 = arith.constant 0 : index
    %c0_35 = arith.constant 0 : index
    %58 = vector.load %arg3[%c0_34, %c0_35] : memref<8x16xf32, #tpu.memory_space<vmem>>, vector<8x16xf32>
    %59 = arith.addf %57, %58 : vector<8x16xf32>
    %cst_36 = arith.constant dense<0xFF800000> : vector<8xf32>
    %60 = vector.multi_reduction <maximumf>, %59, %cst_36 [1] : vector<8x16xf32> to vector<8xf32>
    %61 = vector.shape_cast %60 : vector<8xf32> to vector<8x1xf32>
    %62 = vector.broadcast %61 : vector<8x1xf32> to vector<8x16xf32>
    %63 = arith.subf %59, %62 : vector<8x16xf32>
    %64 = math.exp %63 : vector<8x16xf32>
    %cst_37 = arith.constant dense<0.000000e+00> : vector<8xf32>
    %65 = vector.multi_reduction <add>, %64, %cst_37 [1] : vector<8x16xf32> to vector<8xf32>
    %66 = vector.shape_cast %65 : vector<8xf32> to vector<8x1xf32>
    %67 = tpu.reciprocal %66 {approx = true} : vector<8x1xf32> -> vector<8x1xf32>
    %68 = vector.broadcast %67 : vector<8x1xf32> to vector<8x16xf32>
    %69 = arith.mulf %64, %68 : vector<8x16xf32>
    %cst_38 = arith.constant dense<0.000000e+00> : vector<8x32xf32>
    %70 = tpu.matmul %69, %46, %cst_38 {dimension_numbers = #tpu.dot_dimension_numbers<[1], [0], [0], [1], [0, 0, 1, 1], [], []>} : vector<8x16xf32>, vector<16x32xf32>, vector<8x32xf32> -> vector<8x32xf32>
    %71 = arith.mulf %70, %52 : vector<8x32xf32>
    %c0_39 = arith.constant 0 : index
    %c0_40 = arith.constant 0 : index
    %72 = vector.load %arg4[%c0_39, %c0_40] : memref<2x8xf32, #tpu.memory_space<vmem>>, vector<2x8xf32>
    %cst_41 = arith.constant dense<0.000000e+00> : vector<2x32xf32>
    %73 = tpu.matmul %72, %71, %cst_41 {dimension_numbers = #tpu.dot_dimension_numbers<[1], [0], [0], [1], [0, 0, 1, 1], [], []>} : vector<2x8xf32>, vector<8x32xf32>, vector<2x32xf32> -> vector<2x32xf32>
    %c4 = arith.constant 4 : index
    %c0_42 = arith.constant 0 : index
    %c0_43 = arith.constant 0 : index
    %74 = vector.load %arg5[%c4, %c0_42, %c0_43] : memref<19x32x32xf32, #tpu.memory_space<vmem>>, vector<1x32x32xf32>
    %75 = vector.shape_cast %74 : vector<1x32x32xf32> to vector<32x32xf32>
    %cst_44 = arith.constant dense<0.000000e+00> : vector<2x32xf32>
    %76 = tpu.matmul %73, %75, %cst_44 {dimension_numbers = #tpu.dot_dimension_numbers<[1], [0], [0], [1], [0, 0, 1, 1], [], []>} : vector<2x32xf32>, vector<32x32xf32>, vector<2x32xf32> -> vector<2x32xf32>
    %cst_45 = arith.constant 0.000000e+00 : f32
    %77 = vector.broadcast %cst_45 : f32 to vector<2x32xf32>
    %78 = arith.maximumf %76, %77 : vector<2x32xf32>
    %c5 = arith.constant 5 : index
    %c0_46 = arith.constant 0 : index
    %c0_47 = arith.constant 0 : index
    %79 = vector.load %arg5[%c5, %c0_46, %c0_47] : memref<19x32x32xf32, #tpu.memory_space<vmem>>, vector<1x32x32xf32>
    %80 = vector.shape_cast %79 : vector<1x32x32xf32> to vector<32x32xf32>
    %c6 = arith.constant 6 : index
    %c0_48 = arith.constant 0 : index
    %c0_49 = arith.constant 0 : index
    %81 = vector.load %arg5[%c6, %c0_48, %c0_49] : memref<19x32x32xf32, #tpu.memory_space<vmem>>, vector<1x32x32xf32>
    %82 = vector.shape_cast %81 : vector<1x32x32xf32> to vector<32x32xf32>
    %c7 = arith.constant 7 : index
    %c0_50 = arith.constant 0 : index
    %c0_51 = arith.constant 0 : index
    %83 = vector.load %arg5[%c7, %c0_50, %c0_51] : memref<19x32x32xf32, #tpu.memory_space<vmem>>, vector<1x32x32xf32>
    %84 = vector.shape_cast %83 : vector<1x32x32xf32> to vector<32x32xf32>
    %c8 = arith.constant 8 : index
    %c0_52 = arith.constant 0 : index
    %c0_53 = arith.constant 0 : index
    %85 = vector.load %arg5[%c8, %c0_52, %c0_53] : memref<19x32x32xf32, #tpu.memory_space<vmem>>, vector<1x32x32xf32>
    %86 = vector.shape_cast %85 : vector<1x32x32xf32> to vector<32x32xf32>
    %c9 = arith.constant 9 : index
    %c0_54 = arith.constant 0 : index
    %c0_55 = arith.constant 0 : index
    %87 = vector.load %arg5[%c9, %c0_54, %c0_55] : memref<19x32x32xf32, #tpu.memory_space<vmem>>, vector<1x32x32xf32>
    %88 = vector.shape_cast %87 : vector<1x32x32xf32> to vector<32x32xf32>
    %c10 = arith.constant 10 : index
    %c0_56 = arith.constant 0 : index
    %c0_57 = arith.constant 0 : index
    %89 = vector.load %arg5[%c10, %c0_56, %c0_57] : memref<19x32x32xf32, #tpu.memory_space<vmem>>, vector<1x32x32xf32>
    %90 = vector.shape_cast %89 : vector<1x32x32xf32> to vector<32x32xf32>
    %cst_58 = arith.constant dense<0.000000e+00> : vector<2x32xf32>
    %91 = tpu.matmul %78, %80, %cst_58 {dimension_numbers = #tpu.dot_dimension_numbers<[1], [0], [0], [1], [0, 0, 1, 1], [], []>} : vector<2x32xf32>, vector<32x32xf32>, vector<2x32xf32> -> vector<2x32xf32>
    %cst_59 = arith.constant dense<0.000000e+00> : vector<2x32xf32>
    %92 = tpu.matmul %48, %82, %cst_59 {dimension_numbers = #tpu.dot_dimension_numbers<[1], [0], [0], [1], [0, 0, 1, 1], [], []>} : vector<2x32xf32>, vector<32x32xf32>, vector<2x32xf32> -> vector<2x32xf32>
    %93 = arith.addf %91, %92 : vector<2x32xf32>
    %94 = arith.negf %93 : vector<2x32xf32>
    %95 = math.exp %94 : vector<2x32xf32>
    %cst_60 = arith.constant 1.000000e+00 : f32
    %96 = vector.broadcast %cst_60 : f32 to vector<2x32xf32>
    %97 = arith.addf %96, %95 : vector<2x32xf32>
    %98 = arith.divf %96, %97 : vector<2x32xf32>
    %cst_61 = arith.constant dense<0.000000e+00> : vector<2x32xf32>
    %99 = tpu.matmul %78, %84, %cst_61 {dimension_numbers = #tpu.dot_dimension_numbers<[1], [0], [0], [1], [0, 0, 1, 1], [], []>} : vector<2x32xf32>, vector<32x32xf32>, vector<2x32xf32> -> vector<2x32xf32>
    %cst_62 = arith.constant dense<0.000000e+00> : vector<2x32xf32>
    %100 = tpu.matmul %48, %86, %cst_62 {dimension_numbers = #tpu.dot_dimension_numbers<[1], [0], [0], [1], [0, 0, 1, 1], [], []>} : vector<2x32xf32>, vector<32x32xf32>, vector<2x32xf32> -> vector<2x32xf32>
    %101 = arith.addf %99, %100 : vector<2x32xf32>
    %102 = vector.broadcast %7 : vector<1x32xf32> to vector<2x32xf32>
    %103 = arith.subf %101, %102 : vector<2x32xf32>
    %104 = arith.negf %103 : vector<2x32xf32>
    %105 = math.exp %104 : vector<2x32xf32>
    %cst_63 = arith.constant 1.000000e+00 : f32
    %106 = vector.broadcast %cst_63 : f32 to vector<2x32xf32>
    %107 = arith.addf %106, %105 : vector<2x32xf32>
    %108 = arith.divf %106, %107 : vector<2x32xf32>
    %cst_64 = arith.constant dense<0.000000e+00> : vector<2x32xf32>
    %109 = tpu.matmul %78, %88, %cst_64 {dimension_numbers = #tpu.dot_dimension_numbers<[1], [0], [0], [1], [0, 0, 1, 1], [], []>} : vector<2x32xf32>, vector<32x32xf32>, vector<2x32xf32> -> vector<2x32xf32>
    %110 = arith.mulf %98, %48 : vector<2x32xf32>
    %cst_65 = arith.constant dense<0.000000e+00> : vector<2x32xf32>
    %111 = tpu.matmul %110, %90, %cst_65 {dimension_numbers = #tpu.dot_dimension_numbers<[1], [0], [0], [1], [0, 0, 1, 1], [], []>} : vector<2x32xf32>, vector<32x32xf32>, vector<2x32xf32> -> vector<2x32xf32>
    %112 = arith.addf %109, %111 : vector<2x32xf32>
    %113 = math.tanh %112 : vector<2x32xf32>
    %cst_66 = arith.constant 1.000000e+00 : f32
    %114 = vector.broadcast %cst_66 : f32 to vector<2x32xf32>
    %115 = arith.subf %114, %108 : vector<2x32xf32>
    %116 = arith.mulf %115, %48 : vector<2x32xf32>
    %117 = arith.mulf %108, %113 : vector<2x32xf32>
    %118 = arith.addf %116, %117 : vector<2x32xf32>
    %cst_67 = arith.constant dense<0.000000e+00> : vector<2xf32>
    %119 = vector.multi_reduction <add>, %118, %cst_67 [1] : vector<2x32xf32> to vector<2xf32>
    %120 = vector.shape_cast %119 : vector<2xf32> to vector<2x1xf32>
    %cst_68 = arith.constant 3.200000e+01 : f32
    %121 = vector.broadcast %cst_68 : f32 to vector<2x1xf32>
    %122 = arith.divf %120, %121 : vector<2x1xf32>
    %123 = vector.broadcast %122 : vector<2x1xf32> to vector<2x32xf32>
    %124 = arith.subf %118, %123 : vector<2x32xf32>
    %125 = arith.mulf %124, %124 : vector<2x32xf32>
    %cst_69 = arith.constant dense<0.000000e+00> : vector<2xf32>
    %126 = vector.multi_reduction <add>, %125, %cst_69 [1] : vector<2x32xf32> to vector<2xf32>
    %127 = vector.shape_cast %126 : vector<2xf32> to vector<2x1xf32>
    %cst_70 = arith.constant 3.200000e+01 : f32
    %128 = vector.broadcast %cst_70 : f32 to vector<2x1xf32>
    %129 = arith.divf %127, %128 : vector<2x1xf32>
    %130 = vector.broadcast %122 : vector<2x1xf32> to vector<2x32xf32>
    %131 = arith.subf %118, %130 : vector<2x32xf32>
    %cst_71 = arith.constant 9.99999974E-6 : f32
    %132 = vector.broadcast %cst_71 : f32 to vector<2x1xf32>
    %133 = arith.addf %129, %132 : vector<2x1xf32>
    %134 = math.rsqrt %133 : vector<2x1xf32>
    %135 = vector.broadcast %134 : vector<2x1xf32> to vector<2x32xf32>
    %136 = arith.mulf %131, %135 : vector<2x32xf32>
    %137 = vector.broadcast %5 : vector<1x32xf32> to vector<2x32xf32>
    %138 = arith.mulf %136, %137 : vector<2x32xf32>
    %139 = vector.broadcast %6 : vector<1x32xf32> to vector<2x32xf32>
    %140 = arith.addf %138, %139 : vector<2x32xf32>
    %c17_72 = arith.constant 17 : index
    %c0_73 = arith.constant 0 : index
    %c0_74 = arith.constant 0 : index
    %141 = vector.load %arg5[%c17_72, %c0_73, %c0_74] : memref<19x32x32xf32, #tpu.memory_space<vmem>>, vector<1x32x32xf32>
    %142 = vector.shape_cast %141 : vector<1x32x32xf32> to vector<32x32xf32>
    %cst_75 = arith.constant dense<0.000000e+00> : vector<2x32xf32>
    %143 = tpu.matmul %140, %142, %cst_75 {dimension_numbers = #tpu.dot_dimension_numbers<[1], [0], [0], [1], [0, 0, 1, 1], [], []>} : vector<2x32xf32>, vector<32x32xf32>, vector<2x32xf32> -> vector<2x32xf32>
    %144 = vector.broadcast %9 : vector<1x32xf32> to vector<2x32xf32>
    %145 = arith.addf %143, %144 : vector<2x32xf32>
    %cst_76 = arith.constant 0.000000e+00 : f32
    %146 = vector.broadcast %cst_76 : f32 to vector<2x32xf32>
    %147 = arith.maximumf %145, %146 : vector<2x32xf32>
    %c18_77 = arith.constant 18 : index
    %c0_78 = arith.constant 0 : index
    %c0_79 = arith.constant 0 : index
    %148 = vector.load %arg5[%c18_77, %c0_78, %c0_79] : memref<19x32x32xf32, #tpu.memory_space<vmem>>, vector<1x32x32xf32>
    %149 = vector.shape_cast %148 : vector<1x32x32xf32> to vector<32x32xf32>
    %cst_80 = arith.constant dense<0.000000e+00> : vector<2x32xf32>
    %150 = tpu.matmul %147, %149, %cst_80 {dimension_numbers = #tpu.dot_dimension_numbers<[1], [0], [0], [1], [0, 0, 1, 1], [], []>} : vector<2x32xf32>, vector<32x32xf32>, vector<2x32xf32> -> vector<2x32xf32>
    %151 = vector.broadcast %10 : vector<1x32xf32> to vector<2x32xf32>
    %152 = arith.addf %150, %151 : vector<2x32xf32>
    %c11 = arith.constant 11 : index
    %c0_81 = arith.constant 0 : index
    %c0_82 = arith.constant 0 : index
    %153 = vector.load %arg5[%c11, %c0_81, %c0_82] : memref<19x32x32xf32, #tpu.memory_space<vmem>>, vector<1x32x32xf32>
    %154 = vector.shape_cast %153 : vector<1x32x32xf32> to vector<32x32xf32>
    %c12 = arith.constant 12 : index
    %c0_83 = arith.constant 0 : index
    %c0_84 = arith.constant 0 : index
    %155 = vector.load %arg5[%c12, %c0_83, %c0_84] : memref<19x32x32xf32, #tpu.memory_space<vmem>>, vector<1x32x32xf32>
    %156 = vector.shape_cast %155 : vector<1x32x32xf32> to vector<32x32xf32>
    %c13 = arith.constant 13 : index
    %c0_85 = arith.constant 0 : index
    %c0_86 = arith.constant 0 : index
    %157 = vector.load %arg5[%c13, %c0_85, %c0_86] : memref<19x32x32xf32, #tpu.memory_space<vmem>>, vector<1x32x32xf32>
    %158 = vector.shape_cast %157 : vector<1x32x32xf32> to vector<32x32xf32>
    %c14 = arith.constant 14 : index
    %c0_87 = arith.constant 0 : index
    %c0_88 = arith.constant 0 : index
    %159 = vector.load %arg5[%c14, %c0_87, %c0_88] : memref<19x32x32xf32, #tpu.memory_space<vmem>>, vector<1x32x32xf32>
    %160 = vector.shape_cast %159 : vector<1x32x32xf32> to vector<32x32xf32>
    %c15 = arith.constant 15 : index
    %c0_89 = arith.constant 0 : index
    %c0_90 = arith.constant 0 : index
    %161 = vector.load %arg5[%c15, %c0_89, %c0_90] : memref<19x32x32xf32, #tpu.memory_space<vmem>>, vector<1x32x32xf32>
    %162 = vector.shape_cast %161 : vector<1x32x32xf32> to vector<32x32xf32>
    %c16_91 = arith.constant 16 : index
    %c0_92 = arith.constant 0 : index
    %c0_93 = arith.constant 0 : index
    %163 = vector.load %arg5[%c16_91, %c0_92, %c0_93] : memref<19x32x32xf32, #tpu.memory_space<vmem>>, vector<1x32x32xf32>
    %164 = vector.shape_cast %163 : vector<1x32x32xf32> to vector<32x32xf32>
    %cst_94 = arith.constant dense<0.000000e+00> : vector<2x32xf32>
    %165 = tpu.matmul %152, %154, %cst_94 {dimension_numbers = #tpu.dot_dimension_numbers<[1], [0], [0], [1], [0, 0, 1, 1], [], []>} : vector<2x32xf32>, vector<32x32xf32>, vector<2x32xf32> -> vector<2x32xf32>
    %cst_95 = arith.constant dense<0.000000e+00> : vector<2x32xf32>
    %166 = tpu.matmul %118, %156, %cst_95 {dimension_numbers = #tpu.dot_dimension_numbers<[1], [0], [0], [1], [0, 0, 1, 1], [], []>} : vector<2x32xf32>, vector<32x32xf32>, vector<2x32xf32> -> vector<2x32xf32>
    %167 = arith.addf %165, %166 : vector<2x32xf32>
    %168 = arith.negf %167 : vector<2x32xf32>
    %169 = math.exp %168 : vector<2x32xf32>
    %cst_96 = arith.constant 1.000000e+00 : f32
    %170 = vector.broadcast %cst_96 : f32 to vector<2x32xf32>
    %171 = arith.addf %170, %169 : vector<2x32xf32>
    %172 = arith.divf %170, %171 : vector<2x32xf32>
    %cst_97 = arith.constant dense<0.000000e+00> : vector<2x32xf32>
    %173 = tpu.matmul %152, %158, %cst_97 {dimension_numbers = #tpu.dot_dimension_numbers<[1], [0], [0], [1], [0, 0, 1, 1], [], []>} : vector<2x32xf32>, vector<32x32xf32>, vector<2x32xf32> -> vector<2x32xf32>
    %cst_98 = arith.constant dense<0.000000e+00> : vector<2x32xf32>
    %174 = tpu.matmul %118, %160, %cst_98 {dimension_numbers = #tpu.dot_dimension_numbers<[1], [0], [0], [1], [0, 0, 1, 1], [], []>} : vector<2x32xf32>, vector<32x32xf32>, vector<2x32xf32> -> vector<2x32xf32>
    %175 = arith.addf %173, %174 : vector<2x32xf32>
    %176 = vector.broadcast %8 : vector<1x32xf32> to vector<2x32xf32>
    %177 = arith.subf %175, %176 : vector<2x32xf32>
    %178 = arith.negf %177 : vector<2x32xf32>
    %179 = math.exp %178 : vector<2x32xf32>
    %cst_99 = arith.constant 1.000000e+00 : f32
    %180 = vector.broadcast %cst_99 : f32 to vector<2x32xf32>
    %181 = arith.addf %180, %179 : vector<2x32xf32>
    %182 = arith.divf %180, %181 : vector<2x32xf32>
    %cst_100 = arith.constant dense<0.000000e+00> : vector<2x32xf32>
    %183 = tpu.matmul %152, %162, %cst_100 {dimension_numbers = #tpu.dot_dimension_numbers<[1], [0], [0], [1], [0, 0, 1, 1], [], []>} : vector<2x32xf32>, vector<32x32xf32>, vector<2x32xf32> -> vector<2x32xf32>
    %184 = arith.mulf %172, %118 : vector<2x32xf32>
    %cst_101 = arith.constant dense<0.000000e+00> : vector<2x32xf32>
    %185 = tpu.matmul %184, %164, %cst_101 {dimension_numbers = #tpu.dot_dimension_numbers<[1], [0], [0], [1], [0, 0, 1, 1], [], []>} : vector<2x32xf32>, vector<32x32xf32>, vector<2x32xf32> -> vector<2x32xf32>
    %186 = arith.addf %183, %185 : vector<2x32xf32>
    %187 = math.tanh %186 : vector<2x32xf32>
    %cst_102 = arith.constant 1.000000e+00 : f32
    %188 = vector.broadcast %cst_102 : f32 to vector<2x32xf32>
    %189 = arith.subf %188, %182 : vector<2x32xf32>
    %190 = arith.mulf %189, %118 : vector<2x32xf32>
    %191 = arith.mulf %182, %187 : vector<2x32xf32>
    %192 = arith.addf %190, %191 : vector<2x32xf32>
    %c0_103 = arith.constant 0 : index
    %c0_104 = arith.constant 0 : index
    %193 = vector.load %arg6[%c0_103, %c0_104] : memref<2x32xf32, #tpu.memory_space<vmem>>, vector<2x32xf32>
    tpu.vector_store %arg6[%c0_103, %c0_104], %192 {strides = array<i32>} : memref<2x32xf32, #tpu.memory_space<vmem>>, vector<2x32xf32>,
    return
  }
}

</mosaic_0001>

<bundles_post_ra>
// kernel: tpu_custom_call.1
= control target key start
LH: loop header
LB: loop body
LE: loop exit
PB: predicated region body
PF: predicated region fallthrough
CT: control target
= control target key end

     0   :  { %11 = vsyncpa [#allocation3], 0  ;;  %s1314_s0 = inlined_call_operand.hbm [shape: f32[16,32], index: 0, kind: input, shape index: {}]   ;;  %s1315_s1 = inlined_call_operand.hbm [shape: f32[25,32], index: 1, kind: input, shape index: {}]   ;;  %s1316_s2 = inlined_call_operand.hbm [shape: f32[8,32], index: 2, kind: input, shape index: {}]   ;;  %s1317_s3 = inlined_call_operand.hbm [shape: f32[8,16], index: 3, kind: input, shape index: {}]   ;;  %s1318_s4 = inlined_call_operand.vmem [shape: f32[2,8], index: 4, kind: input, shape index: {}]   ;;  %s1319_s5 = inlined_call_operand.hbm [shape: f32[19,32,32], index: 5, kind: input, shape index: {}]   ;;  %s1320_s6 = inlined_call_operand.hbm [shape: f32[2,32], index: 6, kind: output, shape index: {}]  }
   0x1   :  { %12 = vsyncpa [#allocation6], 0 }
   0x2   :  { %13 = vsyncpa [#allocation9], 0 }
   0x3   :  { %14 = vsyncpa [#allocation4], 0  ;;  %s32_s23 = sshll.u32 %s1315_s1, 4  ;;  %s1185_s24 = smov [#allocation5]   ;;  %s33_s23 = int_to_ptr.hbm [resolvable:$true] %s32_s23 }
   0x4   :  { %s34_s25 = sshll.u32 %s1185_s24, 4  ;;  %s57_s28 = sshll.u32 %s1317_s3, 4  ;;  %s35_s25 = int_to_ptr.vmem [resolvable:$true] %s34_s25  ;;  %s58_s28 = int_to_ptr.hbm [resolvable:$true] %s57_s28 }
   0x5   :  { %s1186_s29 = smov 128   ;;  %s1187_s30 = smov 8  }
   0x6   :  { %40 = dma.hbm_to_vmem [thread:$0]  %s33_s23, 512, %s35_s25, [#allocation6], %s1186_s29, %s1186_s29, %s1187_s30  }
   0x7   :  { %s1188_s7 = smov [#allocation8]   ;;  %s19_s11 = sshll.u32 %s1314_s0, 4  ;;  %s20_s11 = int_to_ptr.hbm [resolvable:$true] %s19_s11 }
   0x8   :  { %s59_s8 = sshll.u32 %s1188_s7, 4  ;;  %s46_s13 = sshll.u32 %s1316_s2, 4  ;;  %s60_s8 = int_to_ptr.vmem [resolvable:$true] %s59_s8  ;;  %s47_s13 = int_to_ptr.hbm [resolvable:$true] %s46_s13 }
   0x9   :  { %62 = dma.hbm_to_vmem [thread:$0]  %s58_s28, 128, %s60_s8, [#allocation9]  }
   0xa   :  { %s1189_s14 = smov [#allocation2]   ;;  %s1190_s3 = smov [#allocation7]  }
   0xb   :  { %s21_s15 = sshll.u32 %s1189_s14, 4  ;;  %s48_s16 = sshll.u32 %s1190_s3, 4  ;;  %s22_s15 = int_to_ptr.vmem [resolvable:$true] %s21_s15  ;;  %s49_s16 = int_to_ptr.vmem [resolvable:$true] %s48_s16 }
   0xc   :  { %27 = dma.hbm_to_vmem [thread:$0]  %s20_s11, 256, %s22_s15, [#allocation3], %s1186_s29, %s1186_s29, %s1187_s30  }
   0xd   :  { %s69_s19 = sshll.u32 %s1319_s5, 4  ;;  %s1191_s0 = smov [#allocation10]   ;;  %s70_s19 = int_to_ptr.hbm [resolvable:$true] %s69_s19 }
   0xe   :  { %51 = dma.hbm_to_vmem [thread:$0]  %s47_s13, 128, %s49_s16, [#allocation6]  }
   0xf   :  { %s71_s20 = sshll.u32 %s1191_s0, 4  ;;  %s72_s20 = int_to_ptr.vmem [resolvable:$true] %s71_s20 }
  0x10   :  { %77 = dma.hbm_to_vmem [thread:$0]  %s70_s19, 9728, %s72_s20, [#allocation9], %s1186_s29, %s1186_s29, %s1187_s30  }
  0x11   :  { %1177 = dma.done.wait [#allocation3], 256  }
  0x12   :  { %1178 = vsyncadd [#allocation3], 4294967040 }
  0x13   :  { %1179 = dma.done.wait [#allocation6], 640  }
  0x14   :  { %1180 = vsyncadd [#allocation6], 4294966656 }
  0x15   :  { %1181 = dma.done.wait [#allocation9], 9856  }
  0x16   :  { %1182 = vsyncadd [#allocation9], 4294957440  ;;  %v114_v0 = vld [vmem:[#allocation10 + $0x18] sm:$0xff]  ;;  %v113_v1 = vld [vmem:[#allocation10 + $0x10] sm:$0xff]  ;;  %vm116_vm0 = vcmask 261120   ;;  %v1192_v19 = vmov 32.0  }
  0x17   :  { %135 = vmatpush.msra.mxu0 %v114_v0  ;;  %v112_v2 = vld [vmem:[#allocation10 + $0x8] sm:$0xff]  ;;  %v111_v3 = vld [vmem:[#allocation10] sm:$0xff]  ;;  %v100_v9 = vld [vmem:[#allocation5] sm:$0xff]  ;;  %1001 = vrcp.f32 %v1192_v19  ;;  %vm305_vm8 = vcmask 1041408   ;;  %vm307_vm9 = vcmask 1043456   ;;  %vm309_vm10 = vcmask 1045504  }
  0x18   :  { %v98_v4 = vld [vmem:[#allocation2] sm:$0xff]  ;;  %v99_v5 = vld [vmem:[#allocation2 + $0x8] sm:$0xff]  ;;  %v101_v15 = vld [vmem:[#allocation5 + $0x8] sm:$0xff]  ;;  %vm344_vm11 = vcmask 130048   ;;  %vm381_vm12 = vcmask 64512   ;;  %s940_s24 = sshll.u32 %s1320_s6, 4  ;;  %s941_s24 = int_to_ptr.hbm [resolvable:$true] %s940_s24 }
  0x19   :  { %136 = vmatpush.msra.mxu0 %v113_v1  ;;  %v992_v6 = vld [vmem:[#allocation5 + $0x10] ss:$0 sm:$0xff]  ;;  %v211_v36 = vld [vmem:[#allocation10 + $0x58] sm:$0xff]  ;;  %v210_v38 = vld [vmem:[#allocation10 + $0x50] sm:$0xff] }
  0x1a   :  { %v245_v37 = vld [vmem:[#allocation10 + $0x78] sm:$0xff]  ;;  %230 = vmatpush.msra.mxu1 %v211_v36  ;;  %v244_v39 = vld [vmem:[#allocation10 + $0x70] sm:$0xff]  ;;  %v209_v40 = vld [vmem:[#allocation10 + $0x48] sm:$0xff] }
  0x1b   :  { %137 = vmatpush.msra.mxu0 %v112_v2  ;;  %258 = vmatpush.msra.mxu2 %v245_v37  ;;  %v243_v41 = vld [vmem:[#allocation10 + $0x68] sm:$0xff]  ;;  %v208_v42 = vld [vmem:[#allocation10 + $0x40] sm:$0xff]  ;;  %v273_v44 = vld [vmem:[#allocation10 + $0x38] sm:$0xff] }
  0x1c   :  { %231 = vmatpush.msra.mxu1 %v210_v38  ;;  %v242_v43 = vld [vmem:[#allocation10 + $0x60] sm:$0xff]  ;;  %v272_v45 = vld [vmem:[#allocation10 + $0x30] sm:$0xff]  ;;  %289 = vmatpush.msra.mxu3 %v273_v44  ;;  %v271_v47 = vld [vmem:[#allocation10 + $0x28] sm:$0xff] }
  0x1d   :  { %138 = vmatpush.msra.mxu0 %v111_v3  ;;  %v1002_v20 = vpop.eup %1001  ;;  %259 = vmatpush.msra.mxu2 %v244_v39  ;;  %v270_v50 = vld [vmem:[#allocation10 + $0x20] sm:$0xff] }
  0x1e   :  { %952 = vmatmul.msk.f32.vlgmr.msra.gmra.mxu0 %vm116_vm0, %v98_v4  ;;  %v157_v21 = vmul.f32 32.0, %v1002_v20  ;;  %vm161_vm1 = vweird.f32 %v1002_v20  ;;  %232 = vmatpush.msra.mxu1 %v209_v40  ;;  %v993_v62 = vld [vmem:[#allocation5 + $0x11] ss:$0 sm:$0xff]  ;;  %v994_v2 = vld [vmem:[#allocation5 + $0x12] ss:$0 sm:$0xff] }
  0x1f   :  { %260 = vmatpush.msra.mxu2 %v243_v41  ;;  %290 = vmatpush.msra.mxu3 %v272_v45  ;;  %v409_v45 = vld [vmem:[#allocation10 + $0x98] sm:$0xff] }
  0x20   :  { %v158_v22 = vsub.f32 1.0, %v157_v21  ;;  %233 = vmatpush.msra.mxu1 %v208_v42 }
  0x21   :  { %261 = vmatpush.msra.mxu2 %v242_v43  ;;  %291 = vmatpush.msra.mxu3 %v271_v47  ;;  %v407_v47 = vld [vmem:[#allocation10 + $0x88] sm:$0xff] }
  0x22   :  { %v159_v23 = vmul.f32 %v1002_v20, %v158_v22 }
  0x23   :  { %292 = vmatpush.msra.mxu3 %v270_v50  ;;  %425 = vmatpush.msrb.mxu2 %v409_v45  ;;  %v380_v50 = vld [vmem:[%s1318_s4] sm:$0x3]  ;;  %s1193_s4 = smov [#allocation11]  }
  0x24   :  { %v160_v24 = vadd.f32 %v1002_v20, %v159_v23  ;;  %s938_s21 = sshll.u32 %s1193_s4, 4  ;;  %s939_s21 = int_to_ptr.vmem [resolvable:$true] %s938_s21 }
  0x26   :  { %953 = vmatmul.msk.f32.gmra.mxu0 %vm116_vm0, %v99_v5  ;;  %v1251_v25 = vsel %vm161_vm1, %v1002_v20, %v160_v24  ;;  %v441_v20 = vld [vmem:[#allocation10 + $0xc8] sm:$0xff]  ;;  %v440_v24 = vld [vmem:[#allocation10 + $0xc0] sm:$0xff] }
  0x9b   :  { %v140_v7 = vpop.f32.mrf.mxu0 }
  0x9c   :  { %v141_v8 = vadd.f32 %v992_v6, %v140_v7 }
  0x9e   :  { %v146_v10 = vmul.f32 5.656854, %v141_v8 }
  0xa0   :  { %v148_v11 = vadd.f32 %v146_v10, %v100_v9 }
  0xa2   :  { %v150_v12 = vsel %vm116_vm0, %v148_v11, 0.0 }
  0xa3   :  { %v143_v13 = vpop.f32.mrf.mxu0  ;;  %151 = vadd.xlane.f32.xlu0 %v150_v12 }
  0xa4   :  { %v144_v14 = vadd.f32 %v992_v6, %v143_v13 }
  0xa6   :  { %v147_v16 = vmul.f32 5.656854, %v144_v14 }
  0xa8   :  { %v1247_v17 = vadd.f32 %v147_v16, %v101_v15  ;;  %v443_v16 = vld [vmem:[#allocation10 + $0xd8] sm:$0xff] }
  0xaa   :  { %v153_v18 = vsel %vm116_vm0, %v1247_v17, 0.0 }
  0xab   :  { %154 = vadd.xlane.f32.xlu0 %v153_v18  ;;  %v442_v18 = vld [vmem:[#allocation10 + $0xd0] sm:$0xff] }
 0x116   :  { %v152_v26 = vpop.xlane.xlu0 %151 }
 0x117   :  { %v163_v27 = vmul.f32 %v1251_v25, %v152_v26 }
 0x119   :  { %v165_v28 = vsub.f32 %v148_v11, %v163_v27 }
 0x11b   :  { %v167_v29 = vmul.f32 %v165_v28, %v165_v28 }
 0x11d   :  { %v169_v30 = vsel %vm116_vm0, %v167_v29, 0.0 }
 0x11e   :  { %170 = vadd.xlane.f32.xlu1 %v169_v30  ;;  %v155_v31 = vpop.xlane.xlu0 %154 }
 0x11f   :  { %v164_v32 = vmul.f32 %v1251_v25, %v155_v31 }
 0x121   :  { %v1257_v33 = vsub.f32 %v1247_v17, %v164_v32  ;;  %v1274_v32 = vrot.slane %v1247_v17, 6 }
 0x123   :  { %v168_v34 = vmul.f32 %v1257_v33, %v1257_v33 }
 0x125   :  { %v172_v35 = vsel %vm116_vm0, %v168_v34, 0.0  ;;  %v342_v34 = vld [vmem:[#allocation8] sm:$0xff] }
 0x126   :  { %173 = vadd.xlane.f32.xlu1 %v172_v35 }
 0x191   :  { %v171_v46 = vpop.xlane.xlu1 %170 }
 0x192   :  { %v175_v48 = vmul.f32 %v171_v46, %v1251_v25  ;;  %v408_v46 = vld [vmem:[#allocation10 + $0x90] sm:$0xff] }
 0x193   :  { %426 = vmatpush.msrb.mxu2 %v408_v46 }
 0x194   :  { %v177_v49 = vadd.f32 1e-05, %v175_v48 }
 0x195   :  { %427 = vmatpush.msrb.mxu2 %v407_v47 }
 0x196   :  { %1003 = vrsqrt.f32 %v177_v49  ;;  %vm185_vm3 = vweird.f32 %v177_v49 }
 0x199   :  { %v174_v51 = vpop.xlane.xlu1 %173 }
 0x19a   :  { %v176_v52 = vmul.f32 %v174_v51, %v1251_v25  ;;  %v453_v51 = vld [vmem:[#allocation10 + $0x118] sm:$0xff] }
 0x19c   :  { %v1004_v53 = vpop.eup %1003  ;;  %v178_v54 = vadd.f32 1e-05, %v176_v52  ;;  %v452_v52 = vld [vmem:[#allocation10 + $0x110] sm:$0xff] }
 0x19d   :  { %v180_v55 = vmul.f32 %v1004_v53, %v177_v49  ;;  %vm186_vm2 = vweird.f32 %v1004_v53 }
 0x19e   :  { %1005 = vrsqrt.f32 %v178_v54  ;;  %vm187_vm4 = vmor %vm185_vm3, %vm186_vm2  ;;  %vm195_vm6 = vweird.f32 %v178_v54 }
 0x19f   :  { %v181_v56 = vmul.f32 %v1004_v53, %v180_v55  ;;  %v406_v55 = vld [vmem:[#allocation10 + $0x80] sm:$0xff] }
 0x1a0   :  { %428 = vmatpush.msrb.mxu2 %v406_v55 }
 0x1a1   :  { %v182_v57 = vmul.f32 0.5, %v181_v56  ;;  %v438_v56 = vld [vmem:[#allocation10 + $0xb8] sm:$0xff] }
 0x1a3   :  { %v183_v58 = vsub.f32 1.5, %v182_v57  ;;  %v448_v57 = vld [vmem:[#allocation10 + $0xf8] sm:$0xff] }
 0x1a4   :  { %v1006_v59 = vpop.eup %1005 }
 0x1a5   :  { %v184_v60 = vmul.f32 %v1004_v53, %v183_v58  ;;  %v190_v61 = vmul.f32 %v1006_v59, %v178_v54  ;;  %vm196_vm5 = vweird.f32 %v1006_v59  ;;  %v450_v54 = vld [vmem:[#allocation10 + $0x100] sm:$0xff]  ;;  %v437_v58 = vld [vmem:[#allocation10 + $0xb0] sm:$0xff] }
 0x1a6   :  { %vm197_vm7 = vmor %vm195_vm6, %vm196_vm5  ;;  %vm641_vm6 = vcmask 254976  }
 0x1a7   :  { %v188_v63 = vsel %vm187_vm4, %v1004_v53, %v184_v60  ;;  %v191_v0 = vmul.f32 %v1006_v59, %v190_v61  ;;  %v451_v53 = vld [vmem:[#allocation10 + $0x108] sm:$0xff] }
 0x1a8   :  { %v199_v1 = vmul.f32 %v188_v63, %v165_v28  ;;  %v297_v28 = vld [vmem:[#allocation7] sm:$0xff]  ;;  %v436_v61 = vld [vmem:[#allocation10 + $0xa8] sm:$0xff]  ;;  %v435_v63 = vld [vmem:[#allocation10 + $0xa0] sm:$0xff] }
 0x1a9   :  { %v192_v3 = vmul.f32 0.5, %v191_v0  ;;  %v445_v0 = vld [vmem:[#allocation10 + $0xe0] sm:$0xff] }
 0x1aa   :  { %v202_v4 = vmul.f32 %v993_v62, %v199_v1  ;;  %v458_v1 = vld [vmem:[#allocation10 + $0x138] sm:$0xff] }
 0x1ab   :  { %v193_v5 = vsub.f32 1.5, %v192_v3  ;;  %v456_v3 = vld [vmem:[#allocation10 + $0x128] sm:$0xff] }
 0x1ac   :  { %v205_v6 = vadd.f32 %v994_v2, %v202_v4  ;;  %v455_v4 = vld [vmem:[#allocation10 + $0x120] sm:$0xff] }
 0x1ad   :  { %v194_v7 = vmul.f32 %v1006_v59, %v193_v5 }
 0x1ae   :  { %954 = vmatmul.msk.f32.vlgmr.msra.gmra.mxu1 %vm116_vm0, %v205_v6  ;;  %956 = vmatmul.msk.f32.vlgmr.msra.gmra.mxu2 %vm116_vm0, %v205_v6 }
 0x1af   :  { %v198_v8 = vsel %vm197_vm7, %v1006_v59, %v194_v7  ;;  %562 = vmatpush.msra.mxu2 %v448_v57  ;;  %v447_v59 = vld [vmem:[#allocation10 + $0xf0] sm:$0xff]  ;;  %v463_v7 = vld [vmem:[#allocation10 + $0x158] sm:$0xff] }
 0x1b0   :  { %v200_v9 = vmul.f32 %v198_v8, %v1257_v33  ;;  %v462_v8 = vld [vmem:[#allocation10 + $0x150] sm:$0xff] }
 0x1b1   :  { %563 = vmatpush.msra.mxu2 %v447_v59 }
 0x1b2   :  { %v203_v10 = vmul.f32 %v993_v62, %v200_v9  ;;  %v446_v62 = vld [vmem:[#allocation10 + $0xe8] sm:$0xff] }
 0x1b3   :  { %564 = vmatpush.msra.mxu2 %v446_v62  ;;  %v461_v9 = vld [vmem:[#allocation10 + $0x148] sm:$0xff] }
 0x1b4   :  { %v206_v11 = vadd.f32 %v994_v2, %v203_v10  ;;  %v457_v2 = vld [vmem:[#allocation10 + $0x130] sm:$0xff]  ;;  %v460_v10 = vld [vmem:[#allocation10 + $0x140] sm:$0xff] }
 0x1b5   :  { %565 = vmatpush.msra.mxu2 %v445_v0 }
 0x1b6   :  { %955 = vmatmul.msk.f32.gmra.mxu1 %vm116_vm0, %v206_v11  ;;  %957 = vmatmul.msk.f32.gmra.mxu2 %vm116_vm0, %v206_v11  ;;  %v274_v12 = vrot.slane %v206_v11, 6 }
 0x1b8   :  { %958 = vmatmul.msk.f32.vlgmr.msra.gmra.mxu3 %vm116_vm0, %v274_v12 }
 0x22b   :  { %v235_v13 = vpop.f32.mrf.mxu1 }
 0x231   :  { %v263_v14 = vpop.f32.mrf.mxu2 }
 0x233   :  { %v238_v15 = vpop.f32.mrf.mxu1 }
 0x234   :  { %959 = vmatpush.xpose.msk.msrb.mxu3 %vm116_vm0, %v238_v15 }
 0x238   :  { %960 = vmatpush.xpose.msk.msrb.mxu3 %vm116_vm0, %v235_v13 }
 0x239   :  { %v266_v19 = vpop.f32.mrf.mxu2 }
 0x23a   :  { %373 = vmatpush.msrb.mxu0 %v266_v19 }
 0x23b   :  { %v294_v21 = vpop.f32.mrf.mxu3 }
 0x23c   :  { %480 = vmatpush.msra.mxu3 %v443_v16  ;;  %v299_v22 = vrot.slane %v294_v21, 6  ;;  %v301_v23 = vrot.slane %v294_v21, 4  ;;  %374 = vmatpush.msrb.mxu0 %v263_v14  ;;  %v303_v26 = vrot.slane %v294_v21, 2 }
 0x23e   :  { %481 = vmatpush.msra.mxu3 %v442_v18  ;;  %v306_v27 = vsel %vm305_vm8, %v294_v21, %v299_v22  ;;  %503 = vmatpush.msra.mxu0 %v438_v56 }
 0x23f   :  { %v308_v29 = vsel %vm307_vm9, %v306_v27, %v301_v23 }
 0x240   :  { %482 = vmatpush.msra.mxu3 %v441_v20  ;;  %v310_v30 = vsel %vm309_vm10, %v308_v29, %v303_v26  ;;  %504 = vmatpush.msra.mxu0 %v437_v58 }
 0x241   :  { %v311_v31 = vmul.f32 %v310_v30, %v297_v28 }
 0x242   :  { %483 = vmatpush.msra.mxu3 %v440_v24  ;;  %505 = vmatpush.msra.mxu0 %v436_v61 }
 0x243   :  { %961 = vmatmul.msk.f32.vlgmr.msrb.gmra.mxu3 %vm116_vm0, %v311_v31 }
 0x244   :  { %506 = vmatpush.msra.mxu0 %v435_v63  ;;  %608 = vmatpush.msrb.mxu3 %v463_v7  ;;  %v744_v7 = vld [vmem:[#allocation10 + $0x1c8] sm:$0xff] }
 0x246   :  { %609 = vmatpush.msrb.mxu3 %v462_v8 }
 0x248   :  { %610 = vmatpush.msrb.mxu3 %v461_v9 }
 0x24a   :  { %611 = vmatpush.msrb.mxu3 %v460_v10  ;;  %v743_v10 = vld [vmem:[#allocation10 + $0x1c0] sm:$0xff] }
 0x24b   :  { %965 = vmatmul.msk.f32.vlgmr.msra.gmra.mxu3 %vm116_vm0, %v1274_v32 }
 0x2c6   :  { %v338_v33 = vpop.f32.mrf.mxu3 }
 0x2c7   :  { %v341_v35 = vmul.f32 0.35355338, %v338_v33 }
 0x2c9   :  { %v343_v36 = vadd.f32 %v342_v34, %v341_v35  ;;  %v995_v34 = vld [vmem:[#allocation5 + $0x15] ss:$0 sm:$0xff] }
 0x2cb   :  { %v345_v37 = vsel %vm344_vm11, %v343_v36, -inf }
 0x2cc   :  { %346 = vmax.xlane.f32.xlu2 %v345_v37 }
 0x2ce   :  { %v485_v11 = vpop.f32.mrf.mxu3 }
 0x33f   :  { %v347_v38 = vpop.xlane.xlu2 %346 }
 0x340   :  { %v348_v39 = vsub.f32 %v343_v36, %v347_v38 }
 0x342   :  { %v349_v40 = vmul.f32 1.442695, %v348_v39  ;;  %v736_v39 = vld [vmem:[#allocation10 + $0x198] sm:$0xff] }
 0x343   :  { %772 = vmatpush.msra.mxu3 %v736_v39  ;;  %v739_v39 = vld [vmem:[#allocation10 + $0x1a8] sm:$0xff] }
 0x344   :  { %1007 = vpow2.f32 %v349_v40  ;;  %v735_v40 = vld [vmem:[#allocation10 + $0x190] sm:$0xff] }
 0x345   :  { %773 = vmatpush.msra.mxu3 %v735_v40  ;;  %v728_v40 = vld [vmem:[#allocation10 + $0x160] sm:$0xff] }
 0x34a   :  { %v1008_v41 = vpop.eup %1007 }
 0x34b   :  { %v351_v42 = vsel %vm344_vm11, %v1008_v41, 0.0 }
 0x34c   :  { %352 = vadd.xlane.f32.xlu2 %v351_v42  ;;  %v733_v42 = vld [vmem:[#allocation10 + $0x180] sm:$0xff] }
 0x3bf   :  { %v353_v43 = vpop.xlane.xlu2 %352 }
 0x3c0   :  { %1009 = vrcp.f32 %v353_v43 }
 0x3c6   :  { %v1010_v17 = vpop.eup %1009 }
 0x3c7   :  { %v355_v44 = vmul.f32 %v1010_v17, %v1008_v41  ;;  %v734_v41 = vld [vmem:[#allocation10 + $0x188] sm:$0xff] }
 0x3c8   :  { %774 = vmatpush.msra.mxu3 %v734_v41  ;;  %v738_v41 = vld [vmem:[#allocation10 + $0x1a0] sm:$0xff] }
 0x3c9   :  { %962 = vmatmul.msk.f32.vlgmr.msrb.gmra.mxu0 %vm344_vm11, %v355_v44 }
 0x3ca   :  { %628 = vmatpush.msrb.mxu0 %v458_v1  ;;  %775 = vmatpush.msra.mxu3 %v733_v42  ;;  %v751_v42 = vld [vmem:[#allocation10 + $0x1f8] sm:$0xff] }
 0x3cc   :  { %629 = vmatpush.msrb.mxu0 %v457_v2  ;;  %v671_v2 = vld [vmem:[#allocation10 + $0x230] sm:$0xff] }
 0x3ce   :  { %630 = vmatpush.msrb.mxu0 %v456_v3  ;;  %v670_v3 = vld [vmem:[#allocation10 + $0x228] sm:$0xff] }
 0x3d0   :  { %631 = vmatpush.msrb.mxu0 %v455_v4  ;;  %v669_v4 = vld [vmem:[#allocation10 + $0x220] sm:$0xff] }
 0x446   :  { %v376_v48 = vpop.f32.mrf.mxu0 }
 0x447   :  { %v379_v49 = vmul.f32 %v376_v48, %v297_v28 }
 0x449   :  { %400 = vmatpush.msrb.mxu1 %v379_v49 }
 0x44a   :  { %963 = vmatmul.msk.f32.vlgmr.msrb.gmra.mxu1 %vm381_vm12, %v380_v50 }
 0x44b   :  { %542 = vmatpush.msra.mxu1 %v453_v51 }
 0x44d   :  { %543 = vmatpush.msra.mxu1 %v452_v52 }
 0x44f   :  { %544 = vmatpush.msra.mxu1 %v451_v53 }
 0x451   :  { %545 = vmatpush.msra.mxu1 %v450_v54 }
 0x452   :  { %968 = vmatmul.msk.f32.vlgmr.msra.gmra.mxu1 %vm116_vm0, %v1274_v32 }
 0x4c7   :  { %v402_v60 = vpop.f32.mrf.mxu1 }
 0x4c8   :  { %964 = vmatmul.msk.f32.vlgmr.msrb.gmra.mxu2 %vm116_vm0, %v402_v60 }
 0x4cf   :  { %v547_v31 = vpop.f32.mrf.mxu1 }
 0x54b   :  { %v430_v5 = vpop.f32.mrf.mxu2 }
 0x54c   :  { %v433_v6 = vmax.f32 %v430_v5, 0.0  ;;  %v746_v5 = vld [vmem:[#allocation10 + $0x1d8] sm:$0xff] }
 0x54e   :  { %966 = vmatmul.msk.f32.vlgmr.msra.gmra.mxu0 %vm116_vm0, %v433_v6  ;;  %969 = vmatmul.msk.f32.vlgmr.msra.gmra.mxu2 %vm116_vm0, %v433_v6 }
 0x556   :  { %972 = vmatmul.msk.f32.vlgmr.msrb.gmra.mxu0 %vm116_vm0, %v433_v6  ;;  %v745_v6 = vld [vmem:[#allocation10 + $0x1d0] sm:$0xff] }
 0x5cb   :  { %v508_v12 = vpop.f32.mrf.mxu0 }
 0x5cc   :  { %v509_v13 = vadd.f32 %v508_v12, %v485_v11  ;;  %v702_v12 = vld [vmem:[#allocation10 + $0x258] sm:$0xff] }
 0x5cd   :  { %719 = vmatpush.msrb.mxu2 %v702_v12 }
 0x5ce   :  { %v967_v14 = vmul.f32 -1.442695, %v509_v13 }
 0x5d0   :  { %1011 = vpow2.f32 %v967_v14 }
 0x5d1   :  { %v567_v30 = vpop.f32.mrf.mxu2 }
 0x5d2   :  { %v568_v33 = vadd.f32 %v567_v30, %v547_v31  ;;  %v741_v30 = vld [vmem:[#allocation10 + $0x1b8] sm:$0xff]  ;;  %v730_v31 = vld [vmem:[#allocation10 + $0x170] sm:$0xff] }
 0x5d3   :  { %v633_v49 = vpop.f32.mrf.mxu0 }
 0x5d4   :  { %v571_v35 = vsub.f32 %v568_v33, %v995_v34  ;;  %v740_v33 = vld [vmem:[#allocation10 + $0x1b0] sm:$0xff]  ;;  %v998_v34 = vld [vmem:[#allocation5 + $0x17] ss:$0 sm:$0xff] }
 0x5d6   :  { %v1012_v15 = vpop.eup %1011  ;;  %v970_v36 = vmul.f32 -1.442695, %v571_v35 }
 0x5d7   :  { %v514_v16 = vadd.f32 1.0, %v1012_v15 }
 0x5d9   :  { %1013 = vrcp.f32 %v514_v16  ;;  %v526_v21 = vand.u32 2147483648, %v514_v16  ;;  %v524_v23 = vand.u32 2147483647, %v514_v16  ;;  %vm520_vm14 = vweird.f32 %v514_v16 }
 0x5da   :  { %1015 = vpow2.f32 %v970_v36 }
 0x5db   :  { %v527_v26 = vor.u32 1.1754944e-38, %v526_v21  ;;  %vm525_vm1 = vcmp.eq.f32.partialorder %v524_v23, 8.507059e+37 }
 0x5df   :  { %v1014_v18 = vpop.eup %1013 }
 0x5e0   :  { %v516_v19 = vmul.f32 %v1014_v18, %v514_v16  ;;  %vm521_vm13 = vweird.f32 %v1014_v18  ;;  %v1016_v37 = vpop.eup %1015 }
 0x5e1   :  { %vm522_vm15 = vmor %vm520_vm14, %vm521_vm13  ;;  %v575_v38 = vadd.f32 1.0, %v1016_v37 }
 0x5e2   :  { %v517_v20 = vsub.f32 1.0, %v516_v19 }
 0x5e3   :  { %1017 = vrcp.f32 %v575_v38  ;;  %v587_v47 = vand.u32 2147483648, %v575_v38  ;;  %vm581_vm3 = vweird.f32 %v575_v38  ;;  %v585_v48 = vand.u32 2147483647, %v575_v38 }
 0x5e4   :  { %v518_v22 = vmul.f32 %v1014_v18, %v517_v20  ;;  %v996_v20 = vld [vmem:[#allocation5 + $0x13] ss:$0 sm:$0xff] }
 0x5e5   :  { %v588_v52 = vor.u32 1.1754944e-38, %v587_v47  ;;  %vm586_vm5 = vcmp.eq.f32.partialorder %v585_v48, 8.507059e+37  ;;  %v756_v48 = vld [vmem:[#allocation10 + $0x218] sm:$0xff] }
 0x5e6   :  { %v519_v24 = vadd.f32 %v1014_v18, %v518_v22 }
 0x5e8   :  { %v523_v27 = vsel %vm522_vm15, %v1014_v18, %v519_v24 }
 0x5e9   :  { %v528_v28 = vsel %vm525_vm1, %v527_v26, %v523_v27  ;;  %v1018_v43 = vpop.eup %1017  ;;  %v701_v26 = vld [vmem:[#allocation10 + $0x250] sm:$0xff]  ;;  %v700_v27 = vld [vmem:[#allocation10 + $0x248] sm:$0xff] }
 0x5ea   :  { %v592_v29 = vmul.f32 %v528_v28, %v1274_v32  ;;  %v577_v17 = vmul.f32 %v1018_v43, %v575_v38  ;;  %vm582_vm2 = vweird.f32 %v1018_v43  ;;  %720 = vmatpush.msrb.mxu2 %v701_v26  ;;  %v699_v28 = vld [vmem:[#allocation10 + $0x240] sm:$0xff]  ;;  %v729_v38 = vld [vmem:[#allocation10 + $0x168] sm:$0xff] }
 0x5eb   :  { %vm583_vm4 = vmor %vm581_vm3, %vm582_vm2 }
 0x5ec   :  { %971 = vmatmul.msk.f32.vlgmr.msrb.gmra.mxu3 %vm116_vm0, %v592_v29  ;;  %v578_v44 = vsub.f32 1.0, %v577_v17  ;;  %721 = vmatpush.msrb.mxu2 %v700_v27  ;;  %v731_v29 = vld [vmem:[#allocation10 + $0x178] sm:$0xff]  ;;  %v749_v17 = vld [vmem:[#allocation10 + $0x1e8] sm:$0xff] }
 0x5ed   :  { %795 = vmatpush.msra.mxu0 %v731_v29  ;;  %899 = vmatpush.msrb.mxu3 %v756_v48 }
 0x5ee   :  { %v579_v45 = vmul.f32 %v1018_v43, %v578_v44  ;;  %722 = vmatpush.msrb.mxu2 %v699_v28  ;;  %v748_v44 = vld [vmem:[#allocation10 + $0x1e0] sm:$0xff] }
 0x5ef   :  { %796 = vmatpush.msra.mxu0 %v730_v31 }
 0x5f0   :  { %v580_v46 = vadd.f32 %v1018_v43, %v579_v45  ;;  %854 = vmatpush.msra.mxu2 %v741_v30  ;;  %v999_v45 = vld [vmem:[#allocation5 + $0x18] ss:$0 sm:$0xff] }
 0x5f1   :  { %797 = vmatpush.msra.mxu0 %v729_v38 }
 0x5f2   :  { %v584_v50 = vsel %vm583_vm4, %v1018_v43, %v580_v46  ;;  %855 = vmatpush.msra.mxu2 %v740_v33  ;;  %v750_v43 = vld [vmem:[#allocation10 + $0x1f0] sm:$0xff] }
 0x5f3   :  { %v589_v54 = vsel %vm586_vm5, %v588_v52, %v584_v50  ;;  %798 = vmatpush.msra.mxu0 %v728_v40  ;;  %v754_v50 = vld [vmem:[#allocation10 + $0x208] sm:$0xff] }
 0x5f4   :  { %v637_v55 = vsub.f32 1.0, %v589_v54  ;;  %856 = vmatpush.msra.mxu2 %v739_v39 }
 0x5f5   :  { %919 = vmatpush.msrb.mxu0 %v751_v42 }
 0x5f6   :  { %v638_v57 = vmul.f32 %v637_v55, %v1274_v32  ;;  %v672_v32 = vld [vmem:[#allocation10 + $0x238] sm:$0xff]  ;;  %857 = vmatpush.msra.mxu2 %v738_v41 }
 0x5f7   :  { %689 = vmatpush.msrb.mxu1 %v672_v32  ;;  %920 = vmatpush.msrb.mxu0 %v750_v43 }
 0x5f9   :  { %690 = vmatpush.msrb.mxu1 %v671_v2  ;;  %921 = vmatpush.msrb.mxu0 %v749_v17 }
 0x5fb   :  { %691 = vmatpush.msrb.mxu1 %v670_v3  ;;  %922 = vmatpush.msrb.mxu0 %v748_v44 }
 0x5fd   :  { %692 = vmatpush.msrb.mxu1 %v669_v4 }
 0x5ff   :  { %834 = vmatpush.msra.mxu1 %v746_v5 }
 0x601   :  { %835 = vmatpush.msra.mxu1 %v745_v6 }
 0x603   :  { %836 = vmatpush.msra.mxu1 %v744_v7 }
 0x605   :  { %837 = vmatpush.msra.mxu1 %v743_v10 }
 0x66f   :  { %v613_v51 = vpop.f32.mrf.mxu3 }
 0x670   :  { %v634_v53 = vadd.f32 %v633_v49, %v613_v51  ;;  %v755_v49 = vld [vmem:[#allocation10 + $0x210] sm:$0xff]  ;;  %v753_v51 = vld [vmem:[#allocation10 + $0x200] sm:$0xff] }
 0x671   :  { %900 = vmatpush.msrb.mxu3 %v755_v49 }
 0x672   :  { %1019 = vtanh.f32 %v634_v53 }
 0x673   :  { %901 = vmatpush.msrb.mxu3 %v754_v50 }
 0x675   :  { %902 = vmatpush.msrb.mxu3 %v753_v51 }
 0x678   :  { %v1020_v56 = vpop.eup %1019 }
 0x679   :  { %v639_v58 = vmul.f32 %v1020_v56, %v589_v54 }
 0x67b   :  { %v1290_v59 = vadd.f32 %v639_v58, %v638_v57 }
 0x67d   :  { %975 = vmatmul.msk.f32.vlgmr.msra.gmra.mxu3 %vm116_vm0, %v1290_v59  ;;  %v642_v60 = vsel %vm641_vm6, %v1290_v59, 0.0 }
 0x67e   :  { %643 = vadd.xlane.f32.xlu0 %v642_v60 }
 0x6f1   :  { %v644_v61 = vpop.xlane.xlu0 %643 }
 0x6f2   :  { %v645_v62 = vmul.f32 %v644_v61, %v1251_v25 }
 0x6f4   :  { %v646_v63 = vsub.f32 %v1290_v59, %v645_v62 }
 0x6f6   :  { %v647_v0 = vmul.f32 %v646_v63, %v646_v63 }
 0x6f8   :  { %v648_v1 = vsel %vm641_vm6, %v647_v0, 0.0 }
 0x6f9   :  { %649 = vadd.xlane.f32.xlu1 %v648_v1 }
 0x700   :  { %v777_v52 = vpop.f32.mrf.mxu3 }
 0x76c   :  { %v650_v8 = vpop.xlane.xlu1 %649 }
 0x76d   :  { %v651_v9 = vmul.f32 %v650_v8, %v1251_v25  ;;  %v997_v25 = vld [vmem:[#allocation5 + $0x14] ss:$0 sm:$0xff]  ;;  %v1000_v8 = vld [vmem:[#allocation5 + $0x16] ss:$0 sm:$0xff] }
 0x76f   :  { %v652_v11 = vadd.f32 1e-05, %v651_v9 }
 0x771   :  { %1021 = vrsqrt.f32 %v652_v11  ;;  %vm659_vm8 = vweird.f32 %v652_v11 }
 0x777   :  { %v1022_v13 = vpop.eup %1021 }
 0x778   :  { %v654_v14 = vmul.f32 %v1022_v13, %v652_v11  ;;  %vm660_vm7 = vweird.f32 %v1022_v13 }
 0x779   :  { %vm661_vm9 = vmor %vm659_vm8, %vm660_vm7 }
 0x77a   :  { %v655_v15 = vmul.f32 %v1022_v13, %v654_v14 }
 0x77c   :  { %v656_v16 = vmul.f32 0.5, %v655_v15 }
 0x77e   :  { %v657_v18 = vsub.f32 1.5, %v656_v16 }
 0x780   :  { %v658_v19 = vmul.f32 %v1022_v13, %v657_v18 }
 0x782   :  { %v662_v21 = vsel %vm661_vm9, %v1022_v13, %v658_v19 }
 0x783   :  { %v663_v22 = vmul.f32 %v662_v21, %v646_v63 }
 0x785   :  { %v665_v23 = vmul.f32 %v996_v20, %v663_v22 }
 0x787   :  { %v667_v24 = vadd.f32 %v997_v25, %v665_v23 }
 0x789   :  { %973 = vmatmul.msk.f32.vlgmr.msrb.gmra.mxu1 %vm116_vm0, %v667_v24 }
 0x791   :  { %978 = vmatmul.msk.f32.vlgmr.msra.gmra.mxu1 %vm116_vm0, %v1290_v59 }
 0x806   :  { %v694_v35 = vpop.f32.mrf.mxu1 }
 0x807   :  { %v695_v36 = vadd.f32 %v998_v34, %v694_v35 }
 0x809   :  { %v697_v37 = vmax.f32 %v695_v36, 0.0 }
 0x80b   :  { %974 = vmatmul.msk.f32.vlgmr.msrb.gmra.mxu2 %vm116_vm0, %v697_v37 }
 0x80e   :  { %v839_v6 = vpop.f32.mrf.mxu1 }
 0x88e   :  { %v724_v46 = vpop.f32.mrf.mxu2 }
 0x88f   :  { %v725_v47 = vadd.f32 %v999_v45, %v724_v46 }
 0x891   :  { %976 = vmatmul.msk.f32.vlgmr.msra.gmra.mxu0 %vm116_vm0, %v725_v47  ;;  %979 = vmatmul.msk.f32.vlgmr.msra.gmra.mxu2 %vm116_vm0, %v725_v47 }
 0x899   :  { %982 = vmatmul.msk.f32.vlgmr.msrb.gmra.mxu0 %vm116_vm0, %v725_v47 }
 0x90e   :  { %v800_v53 = vpop.f32.mrf.mxu0 }
 0x90f   :  { %v801_v54 = vadd.f32 %v800_v53, %v777_v52 }
 0x911   :  { %v977_v55 = vmul.f32 -1.442695, %v801_v54 }
 0x913   :  { %1023 = vpow2.f32 %v977_v55 }
 0x914   :  { %v859_v5 = vpop.f32.mrf.mxu2 }
 0x915   :  { %v860_v7 = vadd.f32 %v859_v5, %v839_v6 }
 0x916   :  { %v924_v21 = vpop.f32.mrf.mxu0 }
 0x917   :  { %v863_v9 = vsub.f32 %v860_v7, %v1000_v8 }
 0x919   :  { %v1024_v56 = vpop.eup %1023  ;;  %v980_v10 = vmul.f32 -1.442695, %v863_v9 }
 0x91a   :  { %v806_v57 = vadd.f32 1.0, %v1024_v56 }
 0x91c   :  { %1025 = vrcp.f32 %v806_v57  ;;  %v818_v62 = vand.u32 2147483648, %v806_v57  ;;  %v816_v0 = vand.u32 2147483647, %v806_v57  ;;  %vm812_vm11 = vweird.f32 %v806_v57 }
 0x91d   :  { %1027 = vpow2.f32 %v980_v10 }
 0x91e   :  { %v819_v32 = vor.u32 1.1754944e-38, %v818_v62  ;;  %vm817_vm13 = vcmp.eq.f32.partialorder %v816_v0, 8.507059e+37 }
 0x922   :  { %v1026_v58 = vpop.eup %1025 }
 0x923   :  { %v808_v60 = vmul.f32 %v1026_v58, %v806_v57  ;;  %vm813_vm10 = vweird.f32 %v1026_v58  ;;  %v1028_v11 = vpop.eup %1027 }
 0x924   :  { %vm814_vm12 = vmor %vm812_vm11, %vm813_vm10  ;;  %v867_v12 = vadd.f32 1.0, %v1028_v11 }
 0x925   :  { %v809_v61 = vsub.f32 1.0, %v808_v60 }
 0x926   :  { %1029 = vrcp.f32 %v867_v12  ;;  %v879_v19 = vand.u32 2147483648, %v867_v12  ;;  %vm873_vm15 = vweird.f32 %v867_v12  ;;  %v877_v20 = vand.u32 2147483647, %v867_v12 }
 0x927   :  { %v810_v63 = vmul.f32 %v1026_v58, %v809_v61 }
 0x928   :  { %v880_v23 = vor.u32 1.1754944e-38, %v879_v19  ;;  %vm878_vm1 = vcmp.eq.f32.partialorder %v877_v20, 8.507059e+37 }
 0x929   :  { %v811_v1 = vadd.f32 %v1026_v58, %v810_v63 }
 0x92b   :  { %v815_v2 = vsel %vm814_vm12, %v1026_v58, %v811_v1 }
 0x92c   :  { %v820_v3 = vsel %vm817_vm13, %v819_v32, %v815_v2  ;;  %v1030_v13 = vpop.eup %1029 }
 0x92d   :  { %v883_v4 = vmul.f32 %v820_v3, %v1290_v59  ;;  %v869_v14 = vmul.f32 %v1030_v13, %v867_v12  ;;  %vm874_vm14 = vweird.f32 %v1030_v13 }
 0x92f   :  { %981 = vmatmul.msk.f32.vlgmr.msrb.gmra.mxu3 %vm116_vm0, %v883_v4  ;;  %v870_v15 = vsub.f32 1.0, %v869_v14  ;;  %vm875_vm0 = vmor %vm873_vm15, %vm874_vm14 }
 0x931   :  { %v871_v16 = vmul.f32 %v1030_v13, %v870_v15 }
 0x933   :  { %v872_v18 = vadd.f32 %v1030_v13, %v871_v16 }
 0x935   :  { %v876_v22 = vsel %vm875_vm0, %v1030_v13, %v872_v18 }
 0x936   :  { %v881_v26 = vsel %vm878_vm1, %v880_v23, %v876_v22 }
 0x937   :  { %v928_v27 = vsub.f32 1.0, %v881_v26 }
 0x939   :  { %v929_v30 = vmul.f32 %v928_v27, %v1290_v59 }
 0x9b2   :  { %v904_v25 = vpop.f32.mrf.mxu3 }
 0x9b3   :  { %v925_v24 = vadd.f32 %v924_v21, %v904_v25 }
 0x9b5   :  { %1031 = vtanh.f32 %v925_v24 }
 0x9bb   :  { %v1032_v28 = vpop.eup %1031 }
 0x9bc   :  { %v930_v29 = vmul.f32 %v1032_v28, %v881_v26 }
 0x9be   :  { %v931_v31 = vadd.f32 %v930_v29, %v929_v30 }
 0x9c0   :  { %932 = vst.msk [vmem:[#allocation11] sm:$0x3] %vm641_vm6, %v931_v31 }
 0x9c1   :  { %943 = dma.vmem_to_hbm [thread:$0]  %s939_s21, 32, %s941_s24, [#allocation4]  }
 0x9c2   :  { %1183 = dma.done.wait [#allocation4], 32  }
 0x9c3   :  { %1184 = vsyncadd [#allocation4], 4294967264 }
 0x9c4   :  { %948 = vsyncpa [#allocation3], 1 }
 0x9c5   :  { %949 = vsyncpa [#allocation6], 1 }
 0x9c6   :  { %950 = vsyncpa [#allocation9], 1 }
 0x9c7   :  { %951 = vsyncpa [#allocation4], 1 }

</bundles_post_ra>
